<compile_context>
chip_gen: v7x
topology: tpu7x:2x2x1
jax: 0.10.0
libtpu: 0.0.40
codegen_flags: <defaults>
</compile_context>

<pallas_src>
import jax
import jax.numpy as jnp
from jax.experimental import pallas as pl
from jax.experimental.pallas import tpu as pltpu

_LANE = 128


def _round_up(x, m):
    return ((x + m - 1) // m) * m


def _rel_mse_jnp(pred, true):
    p = pred.astype(jnp.float32).reshape(-1)
    t = true.astype(jnp.float32).reshape(-1)
    d = p - t
    # mean/mean == sum/sum
    return jnp.sum(d * d) / jnp.sum(t * t)


def _make_kernel(tile_rows, num_tiles, valid_rows_last):
    """Kernel closure over static tiling constants (no scalar prefetch needed)."""
    needs_mask = valid_rows_last < tile_rows

    def kernel(pred_ref, true_ref, num_ref, den_ref):
        i = pl.program_id(0)

        @pl.when(i == 0)
        def _init():
            num_ref[...] = jnp.zeros_like(num_ref)
            den_ref[...] = jnp.zeros_like(den_ref)

        def accumulate(mask_last):
            p = pred_ref[...].astype(jnp.float32)
            t = true_ref[...].astype(jnp.float32)
            if mask_last:
                # Rows >= valid_rows_last are out-of-bounds garbage: zero them
                # before squaring in BOTH numerator and denominator.
                valid = (
                    jax.lax.broadcasted_iota(jnp.int32, (tile_rows, _LANE), 0)
                    < valid_rows_last
                )
                p = jnp.where(valid, p, 0.0)
                t = jnp.where(valid, t, 0.0)
            d = p - t
            # (tile_rows, 128) -> (tile_rows//8, 8, 128): sum only the leading
            # axis (pure VPU vreg adds, no XLU).  The tiny cross-lane reduce
            # happens once in the wrapper on the (8, 128) partials.
            num_ref[...] += jnp.sum((d * d).reshape(-1, 8, _LANE), axis=0)
            den_ref[...] += jnp.sum((t * t).reshape(-1, 8, _LANE), axis=0)

        if not needs_mask:
            accumulate(False)
        else:
            @pl.when(i < num_tiles - 1)
            def _full():
                accumulate(False)

            @pl.when(i == num_tiles - 1)
            def _last():
                accumulate(True)

    return kernel


def relative_mse_loss(pred, true, *, max_tile_rows=8192, min_pallas_elems=1 << 20):
    assert pred.shape == true.shape, "pred and true must have the same shape"
    n = pred.size
    assert n > 0, "inputs must be non-empty"

    rows_full = n // _LANE          # full 128-lane rows
    tail = n - rows_full * _LANE    # leftover elements (< 128)

    # Small inputs (or not even one full 128-lane row): a fused XLA reduce
    # beats a kernel launch.
    if n < min_pallas_elems or rows_full == 0:
        return _rel_mse_jnp(pred, true)

    # Sublane multiple required by the native input dtype(s): 8 (f32),
    # 16 (bf16/f16), 32 (int8/fp8).
    sub_mult = max(
        8,
        32 // jnp.dtype(pred.dtype).itemsize,
        32 // jnp.dtype(true.dtype).itemsize,
    )
    tile_rows = min(
        _round_up(max_tile_rows, sub_mult),
        _round_up(rows_full, sub_mult),
    )
    num_tiles = -(-rows_full // tile_rows)
    valid_rows_last = rows_full - (num_tiles - 1) * tile_rows

    flat_p = pred.reshape(-1)
    flat_t = true.reshape(-1)
    n_main = rows_full * _LANE
    if tail:
        # Prefix slice (may materialize one copy); the <128-element tail is
        # reduced with plain jnp below and added to both sums.
        main_p, main_t = flat_p[:n_main], flat_t[:n_main]
    else:
        # Pure reshape: zero extra HBM traffic.
        main_p, main_t = flat_p, flat_t

    pred2 = main_p.reshape(rows_full, _LANE)
    true2 = main_t.reshape(rows_full, _LANE)

    bytes_accessed = n_main * (
        jnp.dtype(pred.dtype).itemsize + jnp.dtype(true.dtype).itemsize
    )
    cost = pl.CostEstimate(
        flops=5 * n_main, transcendentals=0, bytes_accessed=int(bytes_accessed)
    )

    kernel = _make_kernel(tile_rows, num_tiles, valid_rows_last)

    num_part, den_part = pl.pallas_call(
        kernel,
        out_shape=(
            jax.ShapeDtypeStruct((8, _LANE), jnp.float32),
            jax.ShapeDtypeStruct((8, _LANE), jnp.float32),
        ),
        grid_spec=pltpu.PrefetchScalarGridSpec(
            num_scalar_prefetch=0,
            grid=(num_tiles,),
            in_specs=[
                pl.BlockSpec((tile_rows, _LANE), lambda i: (i, 0)),
                pl.BlockSpec((tile_rows, _LANE), lambda i: (i, 0)),
            ],
            out_specs=[
                # Same block index every step -> resident VMEM accumulators.
                pl.BlockSpec((8, _LANE), lambda i: (0, 0)),
                pl.BlockSpec((8, _LANE), lambda i: (0, 0)),
            ],
        ),
        compiler_params=pltpu.CompilerParams(
            dimension_semantics=("arbitrary",),
            vmem_limit_bytes=40 << 20,
        ),
        cost_estimate=cost,
    )(pred2, true2)

    # Tiny final reduction + divide (mean/mean == sum/sum).
    num = jnp.sum(num_part)
    den = jnp.sum(den_part)
    if tail:
        tp = flat_p[n_main:].astype(jnp.float32)
        tt = flat_t[n_main:].astype(jnp.float32)
        dtl = tp - tt
        num = num + jnp.sum(dtl * dtl)
        den = den + jnp.sum(tt * tt)

    return num / den


if __name__ == "__main__":
    key = jax.random.PRNGKey(0)
    k1, k2, k3, k4 = jax.random.split(key, 4)

    # Module-style tensor pair; 2048 elements is 128-divisible -> zero-copy
    # reshape + Pallas path (min_pallas_elems=0 forces the kernel at this
    # small demo size).
    pred = jax.random.normal(k1, (2, 4, 16, 16), dtype=jnp.float32)
    true = jax.random.normal(k2, (2, 4, 16, 16), dtype=jnp.float32)
    loss = jax.block_until_ready(relative_mse_loss(pred, true, min_pallas_elems=0))
    ref = jnp.mean(jnp.square(pred - true)) / jnp.mean(jnp.square(true))
    assert jnp.allclose(loss, ref, rtol=1e-5, atol=1e-6), (loss, ref)

    # Non-128-divisible size (1005 elements): exercises the in-kernel masked
    # last tile and the wrapper-side tail reduction.
    pred_b = jax.random.normal(k3, (3, 5, 67), dtype=jnp.float32)
    true_b = jax.random.normal(k4, (3, 5, 67), dtype=jnp.float32)
    loss_b = jax.block_until_ready(
        relative_mse_loss(pred_b, true_b, min_pallas_elems=0)
    )
    ref_b = jnp.mean(jnp.square(pred_b - true_b)) / jnp.mean(jnp.square(true_b))
    assert jnp.allclose(loss_b, ref_b, rtol=1e-5, atol=1e-6), (loss_b, ref_b)

    # Default threshold -> pure-jnp small-input fallback path.
    loss_c = jax.block_until_ready(relative_mse_loss(pred, true))
    assert jnp.allclose(loss_c, ref, rtol=1e-5, atol=1e-6), (loss_c, ref)

    print("KERNEL_OK")
</pallas_src>

<mosaic_0001>
module attributes {stable_mosaic.version = 11 : i64} {
  func.func @kernel(%arg0: i32, %arg1: memref<16x128xf32, #tpu.memory_space<vmem>>, %arg2: memref<16x128xf32, #tpu.memory_space<vmem>>, %arg3: memref<8x128xf32, #tpu.memory_space<vmem>>, %arg4: memref<8x128xf32, #tpu.memory_space<vmem>>) attributes {dimension_semantics = [#tpu.dimension_semantics<arbitrary>], iteration_bounds = array<i64: 1>, scalar_prefetch = 0 : i64, scratch_operands = 0 : i64, tpu.core_type = #tpu.core_type<tc>, window_params = [{transform_indices = @transform_0, window_bounds = array<i64: 16, 128>}, {transform_indices = @transform_1, window_bounds = array<i64: 16, 128>}, {pipeline_mode = #tpu.pipeline_mode<synchronous>, transform_indices = @transform_2, window_bounds = array<i64: 8, 128>}, {pipeline_mode = #tpu.pipeline_mode<synchronous>, transform_indices = @transform_3, window_bounds = array<i64: 8, 128>}]} {
    %c0_i32 = arith.constant 0 : i32
    %0 = arith.cmpi eq, %arg0, %c0_i32 : i32
    %1 = arith.extui %0 : i1 to i32
    %c0_i32_0 = arith.constant 0 : i32
    %2 = arith.cmpi ne, %1, %c0_i32_0 : i32
    scf.if %2 {
      %cst_13 = arith.constant 0.000000e+00 : f32
      %18 = vector.broadcast %cst_13 : f32 to vector<8x128xf32>
      %c0_14 = arith.constant 0 : index
      %c0_15 = arith.constant 0 : index
      %19 = vector.load %arg3[%c0_14, %c0_15] : memref<8x128xf32, #tpu.memory_space<vmem>>, vector<8x128xf32>
      tpu.vector_store %arg3[%c0_14, %c0_15], %18 {strides = array<i32>} : memref<8x128xf32, #tpu.memory_space<vmem>>, vector<8x128xf32>,
      %cst_16 = arith.constant 0.000000e+00 : f32
      %20 = vector.broadcast %cst_16 : f32 to vector<8x128xf32>
      %c0_17 = arith.constant 0 : index
      %c0_18 = arith.constant 0 : index
      %21 = vector.load %arg4[%c0_17, %c0_18] : memref<8x128xf32, #tpu.memory_space<vmem>>, vector<8x128xf32>
      tpu.vector_store %arg4[%c0_17, %c0_18], %20 {strides = array<i32>} : memref<8x128xf32, #tpu.memory_space<vmem>>, vector<8x128xf32>,
    } else {
    }
    %c0 = arith.constant 0 : index
    %c0_1 = arith.constant 0 : index
    %3 = vector.load %arg1[%c0, %c0_1] : memref<16x128xf32, #tpu.memory_space<vmem>>, vector<16x128xf32>
    %c0_2 = arith.constant 0 : index
    %c0_3 = arith.constant 0 : index
    %4 = vector.load %arg2[%c0_2, %c0_3] : memref<16x128xf32, #tpu.memory_space<vmem>>, vector<16x128xf32>
    %5 = arith.subf %3, %4 : vector<16x128xf32>
    %c0_4 = arith.constant 0 : index
    %c0_5 = arith.constant 0 : index
    %6 = vector.load %arg3[%c0_4, %c0_5] : memref<8x128xf32, #tpu.memory_space<vmem>>, vector<8x128xf32>
    %7 = arith.mulf %5, %5 : vector<16x128xf32>
    %8 = vector.shape_cast %7 : vector<16x128xf32> to vector<2x8x128xf32>
    %cst = arith.constant dense<0.000000e+00> : vector<8x128xf32>
    %9 = vector.multi_reduction <add>, %8, %cst [0] : vector<2x8x128xf32> to vector<8x128xf32>
    %10 = arith.addf %6, %9 : vector<8x128xf32>
    %c0_6 = arith.constant 0 : index
    %c0_7 = arith.constant 0 : index
    %11 = vector.load %arg3[%c0_6, %c0_7] : memref<8x128xf32, #tpu.memory_space<vmem>>, vector<8x128xf32>
    tpu.vector_store %arg3[%c0_6, %c0_7], %10 {strides = array<i32>} : memref<8x128xf32, #tpu.memory_space<vmem>>, vector<8x128xf32>,
    %c0_8 = arith.constant 0 : index
    %c0_9 = arith.constant 0 : index
    %12 = vector.load %arg4[%c0_8, %c0_9] : memref<8x128xf32, #tpu.memory_space<vmem>>, vector<8x128xf32>
    %13 = arith.mulf %4, %4 : vector<16x128xf32>
    %14 = vector.shape_cast %13 : vector<16x128xf32> to vector<2x8x128xf32>
    %cst_10 = arith.constant dense<0.000000e+00> : vector<8x128xf32>
    %15 = vector.multi_reduction <add>, %14, %cst_10 [0] : vector<2x8x128xf32> to vector<8x128xf32>
    %16 = arith.addf %12, %15 : vector<8x128xf32>
    %c0_11 = arith.constant 0 : index
    %c0_12 = arith.constant 0 : index
    %17 = vector.load %arg4[%c0_11, %c0_12] : memref<8x128xf32, #tpu.memory_space<vmem>>, vector<8x128xf32>
    tpu.vector_store %arg4[%c0_11, %c0_12], %16 {strides = array<i32>} : memref<8x128xf32, #tpu.memory_space<vmem>>, vector<8x128xf32>,
    return
  }
  func.func @transform_0(%arg0: i32) -> (i32, i32) {
    %c0_i32 = arith.constant 0 : i32
    %c0_i32_0 = arith.constant 0 : i32
    return %arg0, %c0_i32 : i32, i32
  }
  func.func @transform_1(%arg0: i32) -> (i32, i32) {
    %c0_i32 = arith.constant 0 : i32
    %c0_i32_0 = arith.constant 0 : i32
    return %arg0, %c0_i32 : i32, i32
  }
  func.func @transform_2(%arg0: i32) -> (i32, i32) {
    %c0_i32 = arith.constant 0 : i32
    %c0_i32_0 = arith.constant 0 : i32
    %c0_i32_1 = arith.constant 0 : i32
    return %c0_i32, %c0_i32_0 : i32, i32
  }
  func.func @transform_3(%arg0: i32) -> (i32, i32) {
    %c0_i32 = arith.constant 0 : i32
    %c0_i32_0 = arith.constant 0 : i32
    %c0_i32_1 = arith.constant 0 : i32
    return %c0_i32, %c0_i32_0 : i32, i32
  }
}

</mosaic_0001>

<bundles_post_ra>
// kernel: tpu_custom_call.1
= control target key start
LH: loop header
LB: loop body
LE: loop exit
PB: predicated region body
PF: predicated region fallthrough
CT: control target
= control target key end

     0   :  { %9 = vsyncpa [#allocation3], 0  ;;  %s274_s0 = inlined_call_operand.hbm [shape: f32[16,128], index: 0, kind: input, shape index: {}]   ;;  %s275_s1 = inlined_call_operand.hbm [shape: f32[16,128], index: 1, kind: input, shape index: {}]   ;;  %s276_s2 = inlined_call_operand.hbm [shape: f32[8,128], index: 2, kind: output, shape index: {0}]   ;;  %s277_s3 = inlined_call_operand.hbm [shape: f32[8,128], index: 3, kind: output, shape index: {1}]  }
   0x1   :  { %10 = vsyncpa [#allocation6], 0 }
   0x2   :  { %11 = vsyncpa [#allocation4], 0 }
   0x3   :  { %12 = vsyncpa [#allocation9], 0  ;;  %s200_s12 = smov [#allocation2]   ;;  %s104_s16 = scalar_lea.hbm %s274_s0, 256 }
   0x4   :  { %s18_s13 = sshll.u32 %s200_s12, 4  ;;  %p105_p0 = scmp.ne.s32.totalorder %s274_s0, %s104_s16  ;;  %s19_s13 = int_to_ptr.vmem [resolvable:$true] %s18_s13 }
   0x5   :  { %p108_p1 = scmp.lt.u32.totalorder %s104_s16, %s274_s0 }
   0x7   :  { %p110_p2 = pnand %p108_p1, %p105_p0 }
   0x9   :  { %113 = shalt.err (!%p110_p2)
}
   0xa   :  { %s114_s21 = scalar_lea.vmem %s19_s13, 256  ;;  %p119_p4 = scmp.lt.s32.totalorder %s19_s13, %s19_s13 }
   0xb   :  { %p115_p3 = scmp.ne.s32.totalorder %s19_s13, %s114_s21  ;;  %p120_p5 = scmp.lt.s32.totalorder %s114_s21, %s114_s21 }
   0xd   :  { %p121_p6 = por %p120_p5, %p119_p4 }
   0xf   :  { %p122_p7 = pnand %p121_p6, %p115_p3 }
  0x11   :  { %125 = shalt.err (!%p122_p7)
}
  0x12   :  { %s201_s22 = smov 128   ;;  %s202_s23 = smov 8  }
  0x13   :  { %24 = dma.hbm_to_vmem [thread:$0]  %s274_s0, 256, %s19_s13, [#allocation3], %s201_s22, %s201_s22, %s202_s23  }
  0x14   :  { %s203_s26 = smov [#allocation5]   ;;  %s126_s30 = scalar_lea.hbm %s275_s1, 256 }
  0x15   :  { %s30_s27 = sshll.u32 %s203_s26, 4  ;;  %p127_p8 = scmp.ne.s32.totalorder %s275_s1, %s126_s30  ;;  %s31_s27 = int_to_ptr.vmem [resolvable:$true] %s30_s27 }
  0x16   :  { %p130_p9 = scmp.lt.u32.totalorder %s126_s30, %s275_s1 }
  0x18   :  { %p132_p10 = pnand %p130_p9, %p127_p8 }
  0x1a   :  { %135 = shalt.err (!%p132_p10)
}
  0x1b   :  { %s136_s8 = scalar_lea.vmem %s31_s27, 256  ;;  %p141_p12 = scmp.lt.s32.totalorder %s31_s27, %s31_s27 }
  0x1c   :  { %p137_p11 = scmp.ne.s32.totalorder %s31_s27, %s136_s8  ;;  %p142_p13 = scmp.lt.s32.totalorder %s136_s8, %s136_s8 }
  0x1e   :  { %p143_p0 = por %p142_p13, %p141_p12 }
  0x20   :  { %p144_p1 = pnand %p143_p0, %p137_p11 }
  0x22   :  { %147 = shalt.err (!%p144_p1)
}
  0x23   :  { %36 = dma.hbm_to_vmem [thread:$0]  %s275_s1, 256, %s31_s27, [#allocation6], %s201_s22, %s201_s22, %s202_s23  }
  0x24   :  { %192 = dma.done.wait [#allocation3], 256  }
  0x25   :  { %193 = vsyncadd [#allocation3], 4294967040 }
  0x26   :  { %194 = dma.done.wait [#allocation6], 256  }
  0x27   :  { %195 = vsyncadd [#allocation6], 4294967040  ;;  %v49_v0 = vld [vmem:[#allocation2] sm:$0xff]  ;;  %v50_v1 = vld [vmem:[#allocation2 + $0x8] sm:$0xff]  ;;  %s204_s10 = smov [#allocation8]   ;;  %s205_s12 = smov [#allocation7]  }
  0x28   :  { %v51_v2 = vld [vmem:[#allocation5] sm:$0xff]  ;;  %v52_v3 = vld [vmem:[#allocation5 + $0x8] sm:$0xff]  ;;  %s83_s11 = sshll.u32 %s204_s10, 4  ;;  %s73_s13 = sshll.u32 %s205_s12, 4  ;;  %s84_s11 = int_to_ptr.vmem [resolvable:$true] %s83_s11  ;;  %s74_s13 = int_to_ptr.vmem [resolvable:$true] %s73_s13 }
  0x29   :  { %v53_v4 = vsub.f32 %v49_v0, %v51_v2  ;;  %v62_v5 = vmul.f32 %v51_v2, %v51_v2  ;;  %v54_v6 = vsub.f32 %v50_v1, %v52_v3  ;;  %v63_v7 = vmul.f32 %v52_v3, %v52_v3  ;;  %s148_s1 = scalar_lea.vmem %s84_s11, 128  ;;  %p153_p3 = scmp.lt.s32.totalorder %s84_s11, %s84_s11 }
  0x2a   :  { %p149_p2 = scmp.ne.s32.totalorder %s84_s11, %s148_s1  ;;  %p154_p4 = scmp.lt.s32.totalorder %s148_s1, %s148_s1 }
  0x2b   :  { %v56_v8 = vmul.f32 %v53_v4, %v53_v4  ;;  %v57_v9 = vmul.f32 %v54_v6, %v54_v6  ;;  %v64_v10 = vadd.f32 %v63_v7, %v62_v5 }
  0x2c   :  { %p155_p5 = por %p154_p4, %p153_p3 }
  0x2d   :  { %v58_v11 = vadd.f32 %v57_v9, %v56_v8  ;;  %66 = vst [vmem:[#allocation8] sm:$0xff] %v64_v10 }
  0x2e   :  { %p156_p6 = pnand %p155_p5, %p149_p2 }
  0x30   :  { %159 = shalt.err (!%p156_p6)
}
  0x31   :  { %s160_s16 = scalar_lea.hbm %s277_s3, 128 }
  0x32   :  { %p161_p7 = scmp.ne.s32.totalorder %s277_s3, %s160_s16  ;;  %p164_p8 = scmp.lt.u32.totalorder %s160_s16, %s277_s3 }
  0x34   :  { %p166_p9 = pnand %p164_p8, %p161_p7 }
  0x36   :  { %169 = shalt.err (!%p166_p9)
}
  0x37   :  { %86 = dma.vmem_to_hbm [thread:$0]  %s84_s11, 128, %s277_s3, [#allocation9]   ;;  %60 = vst [vmem:[#allocation7] sm:$0xff] %v58_v11 }
  0x38   :  { %s170_s23 = scalar_lea.vmem %s74_s13, 128  ;;  %p175_p11 = scmp.lt.s32.totalorder %s74_s13, %s74_s13 }
  0x39   :  { %p171_p10 = scmp.ne.s32.totalorder %s74_s13, %s170_s23  ;;  %p176_p12 = scmp.lt.s32.totalorder %s170_s23, %s170_s23 }
  0x3b   :  { %p177_p13 = por %p176_p12, %p175_p11 }
  0x3d   :  { %p178_p0 = pnand %p177_p13, %p171_p10 }
  0x3f   :  { %181 = shalt.err (!%p178_p0)
}
  0x40   :  { %s182_s26 = scalar_lea.hbm %s276_s2, 128 }
  0x41   :  { %p183_p1 = scmp.ne.s32.totalorder %s276_s2, %s182_s26  ;;  %p186_p2 = scmp.lt.u32.totalorder %s182_s26, %s276_s2 }
  0x43   :  { %p188_p3 = pnand %p186_p2, %p183_p1 }
  0x45   :  { %191 = shalt.err (!%p188_p3)
}
  0x46   :  { %76 = dma.vmem_to_hbm [thread:$0]  %s74_s13, 128, %s276_s2, [#allocation4]  }
  0x47   :  { %196 = dma.done.wait [#allocation4], 128  }
  0x48   :  { %197 = vsyncadd [#allocation4], 4294967168 }
  0x49   :  { %198 = dma.done.wait [#allocation9], 128  }
  0x4a   :  { %199 = vsyncadd [#allocation9], 4294967168 }
  0x4b   :  { %93 = vsyncpa [#allocation3], 1 }
  0x4c   :  { %94 = vsyncpa [#allocation6], 1 }
  0x4d   :  { %95 = vsyncpa [#allocation4], 1 }
  0x4e   :  { %96 = vsyncpa [#allocation9], 1 }

</bundles_post_ra>
